<compile_context>
chip_gen: v6e
topology: v6e:2x2x1
jax: 0.10.0
libtpu: 0.0.40
codegen_flags: <defaults>
</compile_context>

<pallas_src>
import functools

import jax
import jax.numpy as jnp
from jax.experimental import pallas as pl
from jax.experimental.pallas import tpu as pltpu

D_IN, D_H1, D_H2, D_H3, D_OUT = 3, 128, 64, 32, 1


def _round_up(x, m):
    return ((x + m - 1) // m) * m


def _mlp_kernel(chunk,
                x_ref, w1_ref, b1_ref, w2_ref, b2_ref, w3_ref, b3_ref,
                w4_ref, b4_ref, o_ref):
    # Hoist all parameter loads out of the batch-chunk loop.
    w1 = w1_ref[...]          # (128, 3)   PyTorch (out, in)
    b1 = b1_ref[...]          # (128, 1)   lane-broadcast in the add
    w2 = w2_ref[...]          # (64, 128)
    b2 = b2_ref[...]          # (64, 1)
    w3 = w3_ref[...]          # (32, 64)
    b3 = b3_ref[...]          # (32, 1)
    w4 = w4_ref[...]          # (32, 1)    fc4 weight as a column
    b4 = b4_ref[...]          # (1, 1)

    n_chunks = o_ref.shape[1] // chunk      # static

    # Static Python loop -> fully unrolled, all slice offsets static.
    for c in range(n_chunks):
        col = c * chunk
        xc = x_ref[:, col:col + chunk]                       # (3, chunk)

        # fc1 + ReLU: (128,3) @ (3,chunk) -> (128,chunk)
        h1 = jnp.dot(w1, xc, preferred_element_type=jnp.float32)
        h1 = jnp.maximum(h1 + b1, 0.0)
        # fc2 + ReLU: (64,128) @ (128,chunk)
        h2 = jnp.dot(w2, h1, preferred_element_type=jnp.float32)
        h2 = jnp.maximum(h2 + b2, 0.0)
        # fc3 + ReLU: (32,64) @ (64,chunk)
        h3 = jnp.dot(w3, h2, preferred_element_type=jnp.float32)
        h3 = jnp.maximum(h3 + b3, 0.0)
        # fc4: VPU multiply + cross-sublane (XLU) sum -> lane-dense (1, chunk)
        out = jnp.sum(w4 * h3, axis=0, keepdims=True) + b4

        o_ref[:, col:col + chunk] = out.astype(o_ref.dtype)


def mlp_forward(x, params, *, block_b=None, chunk=256):
    """x: (B, 3) float32.  params: PyTorch-layout w{i} (out,in), b{i} (out,1)."""
    B = x.shape[0]

    # --- batch tiling: batch lives on the lane axis -> 128-aligned tiles -----
    if block_b is None:
        block_b = min(2048, _round_up(B, 256))
    block_b = _round_up(block_b, 128)
    chunk = min(chunk, block_b)
    if block_b % chunk:
        chunk = 128                       # block_b is always a 128-multiple
    Bp = _round_up(B, block_b)
    grid = (Bp // block_b,)

    # Feature-major input: (3, Bp), batch on lanes, zero-padded tail.
    x_t = jnp.pad(x, ((0, Bp - B), (0, 0))).T

    w1, b1 = params["w1"], params["b1"]
    w2, b2 = params["w2"], params["b2"]
    w3, b3 = params["w3"], params["b3"]
    w4, b4 = params["w4"].T, params["b4"]         # fc4 weight -> (32, 1) column

    def full_spec(arr):
        return pl.BlockSpec(arr.shape, lambda i: (0, 0))

    flops = 2 * B * (D_IN * D_H1 + D_H1 * D_H2 + D_H2 * D_H3 + D_H3 * D_OUT)
    param_bytes = 4 * (D_H1 * (D_IN + 1) + D_H2 * (D_H1 + 1)
                       + D_H3 * (D_H2 + 1) + D_OUT * (D_H3 + 1))
    cost = pl.CostEstimate(flops=flops, transcendentals=0,
                           bytes_accessed=4 * Bp * (D_IN + 1) + param_bytes)

    out = pl.pallas_call(
        functools.partial(_mlp_kernel, chunk),
        out_shape=jax.ShapeDtypeStruct((1, Bp), x.dtype),
        grid_spec=pltpu.PrefetchScalarGridSpec(
            num_scalar_prefetch=0,
            grid=grid,
            in_specs=[
                pl.BlockSpec((D_IN, block_b), lambda i: (0, i)),   # lane-dense x
                full_spec(w1), full_spec(b1),
                full_spec(w2), full_spec(b2),
                full_spec(w3), full_spec(b3),
                full_spec(w4), full_spec(b4),
            ],
            out_specs=pl.BlockSpec((1, block_b), lambda i: (0, i)),  # lane-dense out
        ),
        compiler_params=pltpu.CompilerParams(
            dimension_semantics=("parallel",),
            vmem_limit_bytes=32 * 1024 * 1024),
        cost_estimate=cost,
    )(x_t, w1, b1, w2, b2, w3, b3, w4, b4)

    return out[0, :B].reshape(B, 1)


def init_params(key):
    """PyTorch nn.Linear-style init: W (out,in), b (out,1), U(-1/sqrt(in), 1/sqrt(in))."""
    dims = [(D_IN, D_H1), (D_H1, D_H2), (D_H2, D_H3), (D_H3, D_OUT)]
    params = {}
    for idx, (fan_in, fan_out) in enumerate(dims, start=1):
        key, kw, kb = jax.random.split(key, 3)
        bound = 1.0 / (fan_in ** 0.5)
        params[f"w{idx}"] = jax.random.uniform(
            kw, (fan_out, fan_in), jnp.float32, minval=-bound, maxval=bound)
        params[f"b{idx}"] = jax.random.uniform(
            kb, (fan_out, 1), jnp.float32, minval=-bound, maxval=bound)
    return params


def mlp_reference(x, params):
    h = x
    for idx in range(1, 4):
        h = jnp.maximum(h @ params[f"w{idx}"].T + params[f"b{idx}"].T, 0.0)
    return h @ params["w4"].T + params["b4"].T


if __name__ == "__main__":
    key = jax.random.PRNGKey(0)
    kp, kx = jax.random.split(key)
    params = init_params(kp)

    batch = 8
    x = jax.random.normal(kx, (batch, D_IN), jnp.float32)

    out = jax.block_until_ready(mlp_forward(x, params))
    ref = mlp_reference(x, params)

    assert out.shape == (batch, 1)
    assert jnp.allclose(out, ref, atol=1e-5, rtol=1e-5)
    print("KERNEL_OK")
</pallas_src>

<mosaic_0001>
module attributes {stable_mosaic.version = 11 : i64} {
  func.func @_mlp_kernel(%arg0: i32, %arg1: memref<3x256xf32, #tpu.memory_space<vmem>>, %arg2: memref<128x3xf32, #tpu.memory_space<vmem>>, %arg3: memref<128x1xf32, #tpu.memory_space<vmem>>, %arg4: memref<64x128xf32, #tpu.memory_space<vmem>>, %arg5: memref<64x1xf32, #tpu.memory_space<vmem>>, %arg6: memref<32x64xf32, #tpu.memory_space<vmem>>, %arg7: memref<32x1xf32, #tpu.memory_space<vmem>>, %arg8: memref<32x1xf32, #tpu.memory_space<vmem>>, %arg9: memref<1x1xf32, #tpu.memory_space<vmem>>, %arg10: memref<1x256xf32, #tpu.memory_space<vmem>>) attributes {dimension_semantics = [#tpu.dimension_semantics<parallel>], iteration_bounds = array<i64: 1>, scalar_prefetch = 0 : i64, scratch_operands = 0 : i64, tpu.core_type = #tpu.core_type<tc>, window_params = [{transform_indices = @transform_0, window_bounds = array<i64: 3, 256>}, {pipeline_mode = #tpu.pipeline_mode<synchronous>, transform_indices = @transform_1, window_bounds = array<i64: 128, 3>}, {pipeline_mode = #tpu.pipeline_mode<synchronous>, transform_indices = @transform_2, window_bounds = array<i64: 128, 1>}, {pipeline_mode = #tpu.pipeline_mode<synchronous>, transform_indices = @transform_3, window_bounds = array<i64: 64, 128>}, {pipeline_mode = #tpu.pipeline_mode<synchronous>, transform_indices = @transform_4, window_bounds = array<i64: 64, 1>}, {pipeline_mode = #tpu.pipeline_mode<synchronous>, transform_indices = @transform_5, window_bounds = array<i64: 32, 64>}, {pipeline_mode = #tpu.pipeline_mode<synchronous>, transform_indices = @transform_6, window_bounds = array<i64: 32, 1>}, {pipeline_mode = #tpu.pipeline_mode<synchronous>, transform_indices = @transform_7, window_bounds = array<i64: 32, 1>}, {pipeline_mode = #tpu.pipeline_mode<synchronous>, transform_indices = @transform_8, window_bounds = array<i64: 1, 1>}, {transform_indices = @transform_9, window_bounds = array<i64: 1, 256>}]} {
    %c0 = arith.constant 0 : index
    %c0_0 = arith.constant 0 : index
    %0 = vector.load %arg2[%c0, %c0_0] : memref<128x3xf32, #tpu.memory_space<vmem>>, vector<128x3xf32>
    %c0_1 = arith.constant 0 : index
    %c0_2 = arith.constant 0 : index
    %1 = vector.load %arg3[%c0_1, %c0_2] : memref<128x1xf32, #tpu.memory_space<vmem>>, vector<128x1xf32>
    %c0_3 = arith.constant 0 : index
    %c0_4 = arith.constant 0 : index
    %2 = vector.load %arg4[%c0_3, %c0_4] : memref<64x128xf32, #tpu.memory_space<vmem>>, vector<64x128xf32>
    %c0_5 = arith.constant 0 : index
    %c0_6 = arith.constant 0 : index
    %3 = vector.load %arg5[%c0_5, %c0_6] : memref<64x1xf32, #tpu.memory_space<vmem>>, vector<64x1xf32>
    %c0_7 = arith.constant 0 : index
    %c0_8 = arith.constant 0 : index
    %4 = vector.load %arg6[%c0_7, %c0_8] : memref<32x64xf32, #tpu.memory_space<vmem>>, vector<32x64xf32>
    %c0_9 = arith.constant 0 : index
    %c0_10 = arith.constant 0 : index
    %5 = vector.load %arg7[%c0_9, %c0_10] : memref<32x1xf32, #tpu.memory_space<vmem>>, vector<32x1xf32>
    %c0_11 = arith.constant 0 : index
    %c0_12 = arith.constant 0 : index
    %6 = vector.load %arg8[%c0_11, %c0_12] : memref<32x1xf32, #tpu.memory_space<vmem>>, vector<32x1xf32>
    %c0_13 = arith.constant 0 : index
    %c0_14 = arith.constant 0 : index
    %7 = vector.load %arg9[%c0_13, %c0_14] : memref<1x1xf32, #tpu.memory_space<vmem>>, vector<1x1xf32>
    %c0_15 = arith.constant 0 : index
    %c0_16 = arith.constant 0 : index
    %8 = vector.load %arg1[%c0_15, %c0_16] : memref<3x256xf32, #tpu.memory_space<vmem>>, vector<3x256xf32>
    %cst = arith.constant dense<0.000000e+00> : vector<128x256xf32>
    %9 = tpu.matmul %0, %8, %cst {dimension_numbers = #tpu.dot_dimension_numbers<[1], [0], [0], [1], [0, 0, 1, 1], [], []>} : vector<128x3xf32>, vector<3x256xf32>, vector<128x256xf32> -> vector<128x256xf32>
    %10 = vector.broadcast %1 : vector<128x1xf32> to vector<128x256xf32>
    %11 = arith.addf %9, %10 : vector<128x256xf32>
    %cst_17 = arith.constant 0.000000e+00 : f32
    %12 = vector.broadcast %cst_17 : f32 to vector<128x256xf32>
    %13 = arith.maximumf %11, %12 : vector<128x256xf32>
    %cst_18 = arith.constant dense<0.000000e+00> : vector<64x256xf32>
    %14 = tpu.matmul %2, %13, %cst_18 {dimension_numbers = #tpu.dot_dimension_numbers<[1], [0], [0], [1], [0, 0, 1, 1], [], []>} : vector<64x128xf32>, vector<128x256xf32>, vector<64x256xf32> -> vector<64x256xf32>
    %15 = vector.broadcast %3 : vector<64x1xf32> to vector<64x256xf32>
    %16 = arith.addf %14, %15 : vector<64x256xf32>
    %cst_19 = arith.constant 0.000000e+00 : f32
    %17 = vector.broadcast %cst_19 : f32 to vector<64x256xf32>
    %18 = arith.maximumf %16, %17 : vector<64x256xf32>
    %cst_20 = arith.constant dense<0.000000e+00> : vector<32x256xf32>
    %19 = tpu.matmul %4, %18, %cst_20 {dimension_numbers = #tpu.dot_dimension_numbers<[1], [0], [0], [1], [0, 0, 1, 1], [], []>} : vector<32x64xf32>, vector<64x256xf32>, vector<32x256xf32> -> vector<32x256xf32>
    %20 = vector.broadcast %5 : vector<32x1xf32> to vector<32x256xf32>
    %21 = arith.addf %19, %20 : vector<32x256xf32>
    %cst_21 = arith.constant 0.000000e+00 : f32
    %22 = vector.broadcast %cst_21 : f32 to vector<32x256xf32>
    %23 = arith.maximumf %21, %22 : vector<32x256xf32>
    %24 = vector.broadcast %6 : vector<32x1xf32> to vector<32x256xf32>
    %25 = arith.mulf %24, %23 : vector<32x256xf32>
    %cst_22 = arith.constant dense<0.000000e+00> : vector<256xf32>
    %26 = vector.multi_reduction <add>, %25, %cst_22 [0] : vector<32x256xf32> to vector<256xf32>
    %27 = vector.shape_cast %26 : vector<256xf32> to vector<1x256xf32>
    %28 = vector.broadcast %7 : vector<1x1xf32> to vector<1x256xf32>
    %29 = arith.addf %27, %28 : vector<1x256xf32>
    %c0_23 = arith.constant 0 : index
    %c0_24 = arith.constant 0 : index
    %30 = vector.load %arg10[%c0_23, %c0_24] : memref<1x256xf32, #tpu.memory_space<vmem>>, vector<1x256xf32>
    tpu.vector_store %arg10[%c0_23, %c0_24], %29 {strides = array<i32>} : memref<1x256xf32, #tpu.memory_space<vmem>>, vector<1x256xf32>,
    return
  }
  func.func @transform_0(%arg0: i32) -> (i32, i32) {
    %c0_i32 = arith.constant 0 : i32
    %c0_i32_0 = arith.constant 0 : i32
    return %c0_i32, %arg0 : i32, i32
  }
  func.func @transform_1(%arg0: i32) -> (i32, i32) {
    %c0_i32 = arith.constant 0 : i32
    %c0_i32_0 = arith.constant 0 : i32
    %c0_i32_1 = arith.constant 0 : i32
    return %c0_i32, %c0_i32_0 : i32, i32
  }
  func.func @transform_2(%arg0: i32) -> (i32, i32) {
    %c0_i32 = arith.constant 0 : i32
    %c0_i32_0 = arith.constant 0 : i32
    %c0_i32_1 = arith.constant 0 : i32
    return %c0_i32, %c0_i32_0 : i32, i32
  }
  func.func @transform_3(%arg0: i32) -> (i32, i32) {
    %c0_i32 = arith.constant 0 : i32
    %c0_i32_0 = arith.constant 0 : i32
    %c0_i32_1 = arith.constant 0 : i32
    return %c0_i32, %c0_i32_0 : i32, i32
  }
  func.func @transform_4(%arg0: i32) -> (i32, i32) {
    %c0_i32 = arith.constant 0 : i32
    %c0_i32_0 = arith.constant 0 : i32
    %c0_i32_1 = arith.constant 0 : i32
    return %c0_i32, %c0_i32_0 : i32, i32
  }
  func.func @transform_5(%arg0: i32) -> (i32, i32) {
    %c0_i32 = arith.constant 0 : i32
    %c0_i32_0 = arith.constant 0 : i32
    %c0_i32_1 = arith.constant 0 : i32
    return %c0_i32, %c0_i32_0 : i32, i32
  }
  func.func @transform_6(%arg0: i32) -> (i32, i32) {
    %c0_i32 = arith.constant 0 : i32
    %c0_i32_0 = arith.constant 0 : i32
    %c0_i32_1 = arith.constant 0 : i32
    return %c0_i32, %c0_i32_0 : i32, i32
  }
  func.func @transform_7(%arg0: i32) -> (i32, i32) {
    %c0_i32 = arith.constant 0 : i32
    %c0_i32_0 = arith.constant 0 : i32
    %c0_i32_1 = arith.constant 0 : i32
    return %c0_i32, %c0_i32_0 : i32, i32
  }
  func.func @transform_8(%arg0: i32) -> (i32, i32) {
    %c0_i32 = arith.constant 0 : i32
    %c0_i32_0 = arith.constant 0 : i32
    %c0_i32_1 = arith.constant 0 : i32
    return %c0_i32, %c0_i32_0 : i32, i32
  }
  func.func @transform_9(%arg0: i32) -> (i32, i32) {
    %c0_i32 = arith.constant 0 : i32
    %c0_i32_0 = arith.constant 0 : i32
    return %c0_i32, %arg0 : i32, i32
  }
}

</mosaic_0001>

<bundles_post_ra>
// kernel: tpu_custom_call.1
= control target key start
LH: loop header
LB: loop body
LE: loop exit
PB: predicated region body
PF: predicated region fallthrough
CT: control target
= control target key end

     0   :  { %s1243_s0 = inlined_call_operand.vmem [shape: f32[3,256], index: 0, kind: input, shape index: {}]   ;;  %s1244_s1 = inlined_call_operand.vmem [shape: f32[128,3], index: 1, kind: input, shape index: {}]   ;;  %s1245_s2 = inlined_call_operand.vmem [shape: f32[128,1], index: 2, kind: input, shape index: {}]   ;;  %s1246_s3 = inlined_call_operand.vmem [shape: f32[64,128], index: 3, kind: input, shape index: {}]   ;;  %s1247_s4 = inlined_call_operand.vmem [shape: f32[64,1], index: 4, kind: input, shape index: {}]   ;;  %s1248_s5 = inlined_call_operand.vmem [shape: f32[32,64], index: 5, kind: input, shape index: {}]   ;;  %s1249_s6 = inlined_call_operand.vmem [shape: f32[32,1], index: 6, kind: input, shape index: {}]   ;;  %s1250_s7 = inlined_call_operand.vmem [shape: f32[32,1], index: 7, kind: input, shape index: {}]   ;;  %s1251_s8 = inlined_call_operand.<no memory space> [shape: f32[1,1], index: 8, kind: input, shape index: {}]   ;;  %s1252_s9 = inlined_call_operand.hbm [shape: f32[1,256], index: 9, kind: output, shape index: {}]  }
   0x1   :  { %v14_v0 = vstv %s1251_s8 }
   0x2   :  { %15 = vst [vmem:[#allocation2] sm:$0x1] %v14_v0 }
   0x3   :  { %v96_v1 = vld [vmem:[%s1243_s0] sm:$0x77]  ;;  %vm228_vm0 = vcmask 1042432   ;;  %v902_v3 = vmov 0.0   ;;  %vm179_vm1 = vcmask 23552   ;;  %v903_v5 = vmov 0  }
   0x4   :  { %v178_v2 = vcombine.high %v96_v1, %v96_v1  ;;  %297 = vmatprep.mubr.f32.mxu0 %v902_v3  ;;  %536 = vmatprep.mubr.f32.mxu1 %v902_v3  ;;  %v35_v4 = vld [vmem:[%s1244_s1] sm:$0xff]  ;;  %v64_v6 = vld [vmem:[%s1245_s2 + $0x68] sm:$0xff]  ;;  %v66_v7 = vld [vmem:[%s1245_s2 + $0x78] sm:$0xff] }
   0x5   :  { %878 = vset.pattern.permute.xlu1 %v903_v5  ;;  %877 = vset.pattern.permute.xlu0 %v903_v5  ;;  %v36_v8 = vld [vmem:[%s1244_s1 + $0x8] sm:$0xff]  ;;  %v63_v9 = vld [vmem:[%s1245_s2 + $0x60] sm:$0xff]  ;;  %v65_v10 = vld [vmem:[%s1245_s2 + $0x70] sm:$0xff] }
   0x6   :  { %819 = vmatprep.subr.msk.mxu0 %vm228_vm0, %v178_v2  ;;  %164 = vperm.xlu1 %878, %v64_v6   ;;  %v37_v11 = vld [vmem:[%s1244_s1 + $0x10] sm:$0xff]  ;;  %v62_v13 = vld [vmem:[%s1245_s2 + $0x58] sm:$0xff]  ;;  %v59_v15 = vld [vmem:[%s1245_s2 + $0x40] sm:$0xff] }
   0x7   :  { %820 = vmatpush1.msk.msra.mxu0 %vm228_vm0, %v96_v1  ;;  %174 = vperm.xlu0 %877, %v66_v7   ;;  %v61_v12 = vld [vmem:[%s1245_s2 + $0x50] sm:$0xff]  ;;  %v38_v14 = vld [vmem:[%s1244_s1 + $0x18] sm:$0xff]  ;;  %v60_v16 = vld [vmem:[%s1245_s2 + $0x48] sm:$0xff] }
   0x8   :  { %821 = vmatmul.mubr.msk.f32.vlgmr.msra.gmra.mxu0 %vm179_vm1, %v35_v4 }
   0x9   :  { %303 = vmatprep.mubr.f32.mxu0 %v902_v3 }
   0xa   :  { %159 = vperm.xlu1 %878, %v63_v9  }
   0xb   :  { %169 = vperm.xlu0 %877, %v65_v10  }
   0xc   :  { %822 = vmatmul.mubr.msk.f32.gmra.mxu0 %vm179_vm1, %v36_v8 }
   0xd   :  { %309 = vmatprep.mubr.f32.mxu0 %v902_v3 }
   0xe   :  { %149 = vperm.xlu1 %878, %v61_v12  }
   0xf   :  { %154 = vperm.xlu0 %877, %v62_v13  }
  0x10   :  { %823 = vmatmul.mubr.msk.f32.gmra.mxu0 %vm179_vm1, %v37_v11 }
  0x11   :  { %315 = vmatprep.mubr.f32.mxu0 %v902_v3 }
  0x12   :  { %139 = vperm.xlu1 %878, %v59_v15  }
  0x14   :  { %824 = vmatmul.mubr.msk.f32.gmra.mxu0 %vm179_vm1, %v38_v14 }
  0x15   :  { %16 = vsyncpa [#allocation4], 0  ;;  %321 = vmatprep.mubr.f32.mxu0 %v902_v3  ;;  %v39_v17 = vld [vmem:[%s1244_s1 + $0x20] sm:$0xff]  ;;  %144 = vperm.xlu0 %877, %v60_v16   ;;  %v57_v18 = vld [vmem:[%s1245_s2 + $0x30] sm:$0xff]  ;;  %vm615_vm2 = vcmask 523264  }
  0x16   :  { %v58_v19 = vld [vmem:[%s1245_s2 + $0x38] sm:$0xff]  ;;  %129 = vperm.xlu1 %878, %v57_v18   ;;  %v40_v20 = vld [vmem:[%s1244_s1 + $0x28] sm:$0xff]  ;;  %v55_v21 = vld [vmem:[%s1245_s2 + $0x20] sm:$0xff] }
  0x17   :  { %v56_v22 = vld [vmem:[%s1245_s2 + $0x28] sm:$0xff]  ;;  %v41_v23 = vld [vmem:[%s1244_s1 + $0x30] sm:$0xff]  ;;  %v54_v25 = vld [vmem:[%s1245_s2 + $0x18] sm:$0xff] }
  0x18   :  { %825 = vmatmul.mubr.msk.f32.gmra.mxu0 %vm179_vm1, %v39_v17  ;;  %v53_v24 = vld [vmem:[%s1245_s2 + $0x10] sm:$0xff]  ;;  %v42_v26 = vld [vmem:[%s1244_s1 + $0x38] sm:$0xff]  ;;  %v51_v27 = vld [vmem:[%s1245_s2] sm:$0xff] }
  0x19   :  { %327 = vmatprep.mubr.f32.mxu0 %v902_v3  ;;  %134 = vperm.xlu0 %877, %v58_v19   ;;  %v52_v28 = vld [vmem:[%s1245_s2 + $0x8] sm:$0xff]  ;;  %v43_v29 = vld [vmem:[%s1244_s1 + $0x40] sm:$0xff]  ;;  %v81_v30 = vld [vmem:[%s1247_s4 + $0x30] sm:$0xff] }
  0x1a   :  { %119 = vperm.xlu1 %878, %v55_v21   ;;  %v82_v31 = vld [vmem:[%s1247_s4 + $0x38] sm:$0xff]  ;;  %v44_v32 = vld [vmem:[%s1244_s1 + $0x48] sm:$0xff]  ;;  %v79_v33 = vld [vmem:[%s1247_s4 + $0x20] sm:$0xff] }
  0x1b   :  { %v80_v34 = vld [vmem:[%s1247_s4 + $0x28] sm:$0xff]  ;;  %v45_v35 = vld [vmem:[%s1244_s1 + $0x50] sm:$0xff]  ;;  %v78_v37 = vld [vmem:[%s1247_s4 + $0x18] sm:$0xff] }
  0x1c   :  { %826 = vmatmul.mubr.msk.f32.gmra.mxu0 %vm179_vm1, %v40_v20  ;;  %v77_v36 = vld [vmem:[%s1247_s4 + $0x10] sm:$0xff]  ;;  %v46_v38 = vld [vmem:[%s1244_s1 + $0x58] sm:$0xff]  ;;  %v75_v39 = vld [vmem:[%s1247_s4] sm:$0xff] }
  0x1d   :  { %333 = vmatprep.mubr.f32.mxu0 %v902_v3  ;;  %124 = vperm.xlu0 %877, %v56_v22   ;;  %v76_v40 = vld [vmem:[%s1247_s4 + $0x8] sm:$0xff]  ;;  %v47_v41 = vld [vmem:[%s1244_s1 + $0x60] sm:$0xff]  ;;  %v90_v45 = vld [vmem:[%s1249_s6 + $0x18] sm:$0xff] }
  0x1e   :  { %109 = vperm.xlu1 %878, %v53_v24   ;;  %v88_v42 = vld [vmem:[%s1249_s6 + $0x8] sm:$0xff]  ;;  %v87_v43 = vld [vmem:[%s1249_s6] sm:$0xff]  ;;  %v89_v46 = vld [vmem:[%s1249_s6 + $0x10] sm:$0xff] }
  0x1f   :  { %v48_v44 = vld [vmem:[%s1244_s1 + $0x68] sm:$0xff]  ;;  %v49_v47 = vld [vmem:[%s1244_s1 + $0x70] sm:$0xff]  ;;  %v91_v49 = vld [vmem:[%s1250_s7] sm:$0xff] }
  0x20   :  { %827 = vmatmul.mubr.msk.f32.gmra.mxu0 %vm179_vm1, %v41_v23  ;;  %v92_v48 = vld [vmem:[%s1250_s7 + $0x8] sm:$0xff]  ;;  %v50_v50 = vld [vmem:[%s1244_s1 + $0x78] sm:$0xff]  ;;  %v93_v52 = vld [vmem:[%s1250_s7 + $0x10] sm:$0xff] }
  0x21   :  { %339 = vmatprep.mubr.f32.mxu0 %v902_v3  ;;  %114 = vperm.xlu0 %877, %v54_v25   ;;  %v94_v51 = vld [vmem:[%s1250_s7 + $0x18] sm:$0xff]  ;;  %v95_v53 = vld [vmem:[#allocation2] sm:$0x1] }
  0x22   :  { %99 = vperm.xlu1 %878, %v51_v27  }
  0x24   :  { %828 = vmatmul.mubr.msk.f32.gmra.mxu0 %vm179_vm1, %v42_v26 }
  0x25   :  { %345 = vmatprep.mubr.f32.mxu0 %v902_v3  ;;  %104 = vperm.xlu0 %877, %v52_v28  }
  0x26   :  { %458 = vperm.xlu1 %878, %v81_v30  }
  0x28   :  { %829 = vmatmul.mubr.msk.f32.gmra.mxu0 %vm179_vm1, %v43_v29 }
  0x29   :  { %351 = vmatprep.mubr.f32.mxu0 %v902_v3  ;;  %463 = vperm.xlu0 %877, %v82_v31  }
  0x2a   :  { %448 = vperm.xlu1 %878, %v79_v33  }
  0x2c   :  { %830 = vmatmul.mubr.msk.f32.gmra.mxu0 %vm179_vm1, %v44_v32 }
  0x2d   :  { %357 = vmatprep.mubr.f32.mxu0 %v902_v3  ;;  %453 = vperm.xlu0 %877, %v80_v34  }
  0x2e   :  { %438 = vperm.xlu1 %878, %v77_v36  }
  0x30   :  { %831 = vmatmul.mubr.msk.f32.gmra.mxu0 %vm179_vm1, %v45_v35 }
  0x31   :  { %363 = vmatprep.mubr.f32.mxu0 %v902_v3  ;;  %443 = vperm.xlu0 %877, %v78_v37  }
  0x32   :  { %428 = vperm.xlu1 %878, %v75_v39  }
  0x34   :  { %832 = vmatmul.mubr.msk.f32.gmra.mxu0 %vm179_vm1, %v46_v38 }
  0x35   :  { %369 = vmatprep.mubr.f32.mxu0 %v902_v3  ;;  %433 = vperm.xlu0 %877, %v76_v40  }
  0x36   :  { %602 = vperm.xlu1 %878, %v88_v42  }
  0x38   :  { %833 = vmatmul.mubr.msk.f32.gmra.mxu0 %vm179_vm1, %v47_v41 }
  0x39   :  { %375 = vmatprep.mubr.f32.mxu0 %v902_v3  ;;  %597 = vperm.xlu0 %877, %v87_v43  }
  0x3a   :  { %612 = vperm.xlu1 %878, %v90_v45  }
  0x3c   :  { %834 = vmatmul.mubr.msk.f32.gmra.mxu0 %vm179_vm1, %v48_v44 }
  0x3d   :  { %381 = vmatprep.mubr.f32.mxu0 %v902_v3  ;;  %607 = vperm.xlu0 %877, %v89_v46  }
  0x3e   :  { %732 = vperm.xlu1 %878, %v92_v48  }
  0x40   :  { %835 = vmatmul.mubr.msk.f32.gmra.mxu0 %vm179_vm1, %v49_v47 }
  0x41   :  { %387 = vmatprep.mubr.f32.mxu0 %v902_v3  ;;  %727 = vperm.xlu0 %877, %v91_v49  }
  0x42   :  { %742 = vperm.xlu1 %878, %v94_v51  }
  0x44   :  { %836 = vmatmul.mubr.msk.f32.gmra.mxu0 %vm179_vm1, %v50_v50 }
  0x45   :  { %737 = vperm.xlu0 %877, %v93_v52   ;;  %530 = vmatprep.mubr.f32.mxu0 %v902_v3 }
  0x49   :  { %773 = vperm.xlu0 %877, %v95_v53  }
  0x81   :  { %v165_v16 = vpop.permute.xlu1 %164 }
  0x82   :  { %v175_v14 = vpop.permute.xlu0 %174 }
  0x85   :  { %v160_v21 = vpop.permute.xlu1 %159 }
  0x86   :  { %v170_v19 = vpop.permute.xlu0 %169 }
  0x89   :  { %v150_v26 = vpop.permute.xlu1 %149 }
  0x8a   :  { %v155_v24 = vpop.permute.xlu0 %154 }
  0x8d   :  { %v140_v34 = vpop.permute.xlu1 %139 }
  0x90   :  { %v145_v30 = vpop.permute.xlu0 %144 }
  0x91   :  { %v130_v48 = vpop.permute.xlu1 %129 }
  0x94   :  { %v135_v43 = vpop.permute.xlu0 %134 }
  0xc8   :  { %v1140_v54 = vpop.f32.mrf.mxu0 }
  0xca   :  { %v1142_v55 = vpop.f32.mrf.mxu0 }
  0xcc   :  { %v1144_v56 = vpop.f32.mrf.mxu0 }
  0xce   :  { %v1146_v57 = vpop.f32.mrf.mxu0 }
  0xd0   :  { %v1148_v58 = vpop.f32.mrf.mxu0 }
  0xd2   :  { %v1150_v59 = vpop.f32.mrf.mxu0 }
  0xd4   :  { %v1152_v60 = vpop.f32.mrf.mxu0 }
  0xd6   :  { %v1154_v61 = vpop.f32.mrf.mxu0 }
  0xd8   :  { %v1156_v62 = vpop.f32.mrf.mxu0 }
  0xda   :  { %v1158_v63 = vpop.f32.mrf.mxu0 }
  0xdc   :  { %v1160_v0 = vpop.f32.mrf.mxu0 }
  0xde   :  { %v1162_v1 = vpop.f32.mrf.mxu0 }
  0xe0   :  { %v1164_v2 = vpop.f32.mrf.mxu0 }
  0xe2   :  { %v1166_v4 = vpop.f32.mrf.mxu0 }
  0xe4   :  { %v1168_v5 = vpop.f32.mrf.mxu0 }
  0xe6   :  { %v1170_v6 = vpop.f32.mrf.mxu0 }
  0xe8   :  { %v1172_v7 = vpop.f32.mrf.mxu0 }
  0xea   :  { %v1174_v8 = vpop.f32.mrf.mxu0 }
  0xec   :  { %v353_v9 = vpop.f32.mrf.mxu0 }
  0xee   :  { %v355_v10 = vpop.f32.mrf.mxu0 }
  0xef   :  { %v356_v53 = vadd.f32 %v355_v10, %v145_v30  ;;  %v344_v10 = vadd.f32 %v1170_v6, %v135_v43 }
  0xf0   :  { %v359_v11 = vpop.f32.mrf.mxu0 }
  0xf1   :  { %v360_v51 = vadd.f32 %v359_v11, %v150_v26 }
  0xf2   :  { %v361_v12 = vpop.f32.mrf.mxu0 }
  0xf3   :  { %v362_v49 = vadd.f32 %v361_v12, %v150_v26  ;;  %v348_v12 = vadd.f32 %v1172_v7, %v140_v34  ;;  %v414_v11 = vmax.f32 %v360_v51, 0.0  ;;  %v336_v7 = vadd.f32 %v1164_v2, %v130_v48 }
  0xf4   :  { %v365_v13 = vpop.f32.mrf.mxu0 }
  0xf5   :  { %v366_v46 = vadd.f32 %v365_v13, %v155_v24  ;;  %v125_v13 = vpop.permute.xlu0 %124 }
  0xf6   :  { %v367_v15 = vpop.f32.mrf.mxu0  ;;  %v332_v6 = vadd.f32 %v1162_v1, %v125_v13 }
  0xf7   :  { %v368_v44 = vadd.f32 %v367_v15, %v155_v24  ;;  %v354_v15 = vadd.f32 %v353_v9, %v145_v30  ;;  %v342_v9 = vadd.f32 %v1168_v5, %v135_v43  ;;  %v330_v5 = vadd.f32 %v1160_v0, %v125_v13  ;;  %v70_v43 = vld [vmem:[%s1246_s3 + $0x18] sm:$0xff] }
  0xf8   :  { %v371_v17 = vpop.f32.mrf.mxu0  ;;  %v405_v30 = vmax.f32 %v332_v6, 0.0 }
  0xf9   :  { %v372_v41 = vadd.f32 %v371_v17, %v160_v21  ;;  %v350_v17 = vadd.f32 %v1174_v8, %v140_v34  ;;  %v338_v8 = vadd.f32 %v1166_v4, %v130_v48  ;;  %v115_v24 = vpop.permute.xlu0 %114  ;;  %v408_v26 = vmax.f32 %v342_v9, 0.0 }
  0xfa   :  { %v373_v18 = vpop.f32.mrf.mxu0  ;;  %v320_v1 = vadd.f32 %v1154_v61, %v115_v24  ;;  %v318_v0 = vadd.f32 %v1152_v60, %v115_v24 }
  0xfb   :  { %v374_v39 = vadd.f32 %v373_v18, %v160_v21  ;;  %v418_v52 = vmax.f32 %v372_v41, 0.0  ;;  %v415_v18 = vmax.f32 %v362_v49, 0.0  ;;  %v412_v21 = vmax.f32 %v354_v15, 0.0 }
  0xfc   :  { %v377_v20 = vpop.f32.mrf.mxu0 }
  0xfd   :  { %v378_v37 = vadd.f32 %v377_v20, %v165_v16  ;;  %v419_v50 = vmax.f32 %v374_v39, 0.0  ;;  %v413_v20 = vmax.f32 %v356_v53, 0.0 }
  0xfe   :  { %v379_v22 = vpop.f32.mrf.mxu0 }
  0xff   :  { %v380_v35 = vadd.f32 %v379_v22, %v165_v16  ;;  %v420_v47 = vmax.f32 %v378_v37, 0.0  ;;  %v416_v16 = vmax.f32 %v366_v46, 0.0  ;;  %v411_v22 = vmax.f32 %v350_v17, 0.0  ;;  %v73_v46 = vld [vmem:[%s1246_s3 + $0x30] sm:$0xff] }
 0x100   :  { %v383_v23 = vpop.f32.mrf.mxu0  ;;  %v400_v37 = vmax.f32 %v318_v0, 0.0 }
 0x101   :  { %v384_v33 = vadd.f32 %v383_v23, %v170_v19  ;;  %v421_v45 = vmax.f32 %v380_v35, 0.0  ;;  %v410_v23 = vmax.f32 %v348_v12, 0.0 }
 0x102   :  { %v385_v25 = vpop.f32.mrf.mxu0 }
 0x103   :  { %v386_v31 = vadd.f32 %v385_v25, %v170_v19  ;;  %v422_v42 = vmax.f32 %v384_v33, 0.0  ;;  %v120_v19 = vpop.permute.xlu1 %119  ;;  %v409_v25 = vmax.f32 %v344_v10, 0.0 }
 0x104   :  { %v389_v27 = vpop.f32.mrf.mxu0  ;;  %v324_v2 = vadd.f32 %v1156_v62, %v120_v19 }
 0x105   :  { %v390_v28 = vadd.f32 %v389_v27, %v175_v14  ;;  %v423_v40 = vmax.f32 %v386_v31, 0.0  ;;  %v326_v27 = vadd.f32 %v1158_v63, %v120_v19  ;;  %v404_v31 = vmax.f32 %v330_v5, 0.0 }
 0x106   :  { %v391_v29 = vpop.f32.mrf.mxu0  ;;  %v402_v34 = vmax.f32 %v324_v2, 0.0 }
 0x107   :  { %v392_v32 = vadd.f32 %v391_v29, %v175_v14  ;;  %v424_v38 = vmax.f32 %v390_v28, 0.0  ;;  %v417_v14 = vmax.f32 %v368_v44, 0.0  ;;  %v110_v4 = vpop.permute.xlu1 %109  ;;  %v407_v28 = vmax.f32 %v338_v8, 0.0  ;;  %v71_v44 = vld [vmem:[%s1246_s3 + $0x20] sm:$0xff] }
 0x108   :  { %v406_v29 = vmax.f32 %v336_v7, 0.0  ;;  %v314_v63 = vadd.f32 %v1150_v59, %v110_v4  ;;  %v403_v33 = vmax.f32 %v326_v27, 0.0  ;;  %v312_v62 = vadd.f32 %v1148_v58, %v110_v4 }
 0x109   :  { %v425_v36 = vmax.f32 %v392_v32, 0.0  ;;  %v105_v32 = vpop.permute.xlu0 %104 }
 0x10a   :  { %v308_v35 = vadd.f32 %v1146_v57, %v105_v32  ;;  %v306_v60 = vadd.f32 %v1144_v56, %v105_v32  ;;  %v398_v39 = vmax.f32 %v312_v62, 0.0 }
 0x10b   :  { %466 = vmatprep.subr.mxu0 %v425_v36  ;;  %841 = vmatprep.subr.mxu1 %v425_v36  ;;  %v100_v61 = vpop.permute.xlu1 %99  ;;  %v401_v36 = vmax.f32 %v320_v1, 0.0 }
 0x10c   :  { %467 = vmatpush1.msra.mxu0 %v424_v38  ;;  %857 = vmatpush1.msra.mxu1 %v424_v38  ;;  %v302_v59 = vadd.f32 %v1142_v55, %v100_v61  ;;  %v399_v38 = vmax.f32 %v314_v63, 0.0  ;;  %v300_v58 = vadd.f32 %v1140_v54, %v100_v61  ;;  %v396_v57 = vmax.f32 %v306_v60, 0.0  ;;  %v67_v55 = vld [vmem:[%s1246_s3] sm:$0xff]  ;;  %v68_v54 = vld [vmem:[%s1246_s3 + $0x8] sm:$0xff] }
 0x10d   :  { %468 = vmatprep.subr.mxu0 %v423_v40  ;;  %842 = vmatprep.subr.mxu1 %v423_v40  ;;  %v397_v40 = vmax.f32 %v308_v35, 0.0  ;;  %v464_v13 = vpop.permute.xlu0 %463 }
 0x10e   :  { %469 = vmatpush1.msra.mxu0 %v422_v42  ;;  %858 = vmatpush1.msra.mxu1 %v422_v42  ;;  %v395_v56 = vmax.f32 %v302_v59, 0.0  ;;  %v394_v41 = vmax.f32 %v300_v58, 0.0  ;;  %v69_v42 = vld [vmem:[%s1246_s3 + $0x10] sm:$0xff] }
 0x10f   :  { %470 = vmatprep.subr.mxu0 %v421_v45  ;;  %843 = vmatprep.subr.mxu1 %v421_v45  ;;  %v72_v45 = vld [vmem:[%s1246_s3 + $0x28] sm:$0xff] }
 0x110   :  { %471 = vmatpush1.msra.mxu0 %v420_v47  ;;  %859 = vmatpush1.msra.mxu1 %v420_v47  ;;  %v74_v47 = vld [vmem:[%s1246_s3 + $0x38] sm:$0xff] }
 0x111   :  { %472 = vmatprep.subr.mxu0 %v419_v50  ;;  %844 = vmatprep.subr.mxu1 %v419_v50  ;;  %v454_v19 = vpop.permute.xlu0 %453 }
 0x112   :  { %473 = vmatpush1.msra.mxu0 %v418_v52  ;;  %860 = vmatpush1.msra.mxu1 %v418_v52 }
 0x113   :  { %474 = vmatprep.subr.mxu0 %v417_v14  ;;  %845 = vmatprep.subr.mxu1 %v417_v14 }
 0x114   :  { %475 = vmatpush1.msra.mxu0 %v416_v16  ;;  %861 = vmatpush1.msra.mxu1 %v416_v16 }
 0x115   :  { %476 = vmatprep.subr.mxu0 %v415_v18  ;;  %846 = vmatprep.subr.mxu1 %v415_v18  ;;  %v459_v18 = vpop.permute.xlu1 %458  ;;  %v444_v6 = vpop.permute.xlu0 %443 }
 0x116   :  { %477 = vmatpush1.msra.mxu0 %v414_v11  ;;  %862 = vmatpush1.msra.mxu1 %v414_v11 }
 0x117   :  { %478 = vmatprep.subr.mxu0 %v413_v20  ;;  %847 = vmatprep.subr.mxu1 %v413_v20 }
 0x118   :  { %479 = vmatpush1.msra.mxu0 %v412_v21  ;;  %863 = vmatpush1.msra.mxu1 %v412_v21 }
 0x119   :  { %480 = vmatprep.subr.mxu0 %v411_v22  ;;  %848 = vmatprep.subr.mxu1 %v411_v22  ;;  %v449_v20 = vpop.permute.xlu1 %448 }
 0x11a   :  { %481 = vmatpush1.msra.mxu0 %v410_v23  ;;  %864 = vmatpush1.msra.mxu1 %v410_v23 }
 0x11b   :  { %482 = vmatprep.subr.mxu0 %v409_v25  ;;  %849 = vmatprep.subr.mxu1 %v409_v25 }
 0x11c   :  { %483 = vmatpush1.msra.mxu0 %v408_v26  ;;  %865 = vmatpush1.msra.mxu1 %v408_v26 }
 0x11d   :  { %484 = vmatprep.subr.mxu0 %v407_v28  ;;  %850 = vmatprep.subr.mxu1 %v407_v28  ;;  %v439_v27 = vpop.permute.xlu1 %438 }
 0x11e   :  { %485 = vmatpush1.msra.mxu0 %v406_v29  ;;  %866 = vmatpush1.msra.mxu1 %v406_v29 }
 0x11f   :  { %486 = vmatprep.subr.mxu0 %v405_v30  ;;  %851 = vmatprep.subr.mxu1 %v405_v30 }
 0x120   :  { %487 = vmatpush1.msra.mxu0 %v404_v31  ;;  %867 = vmatpush1.msra.mxu1 %v404_v31 }
 0x121   :  { %488 = vmatprep.subr.mxu0 %v403_v33  ;;  %852 = vmatprep.subr.mxu1 %v403_v33  ;;  %v434_v33 = vpop.permute.xlu0 %433  ;;  %v429_v60 = vpop.permute.xlu1 %428 }
 0x122   :  { %489 = vmatpush1.msra.mxu0 %v402_v34  ;;  %868 = vmatpush1.msra.mxu1 %v402_v34 }
 0x123   :  { %490 = vmatprep.subr.mxu0 %v401_v36  ;;  %853 = vmatprep.subr.mxu1 %v401_v36 }
 0x124   :  { %491 = vmatpush1.msra.mxu0 %v400_v37  ;;  %869 = vmatpush1.msra.mxu1 %v400_v37 }
 0x125   :  { %492 = vmatprep.subr.mxu0 %v399_v38  ;;  %854 = vmatprep.subr.mxu1 %v399_v38 }
 0x126   :  { %493 = vmatpush1.msra.mxu0 %v398_v39  ;;  %870 = vmatpush1.msra.mxu1 %v398_v39 }
 0x127   :  { %494 = vmatprep.subr.mxu0 %v397_v40  ;;  %855 = vmatprep.subr.mxu1 %v397_v40 }
 0x128   :  { %495 = vmatpush1.msra.mxu0 %v396_v57  ;;  %871 = vmatpush1.msra.mxu1 %v396_v57 }
 0x129   :  { %496 = vmatprep.subr.mxu0 %v395_v56  ;;  %856 = vmatprep.subr.mxu1 %v395_v56 }
 0x12a   :  { %497 = vmatpush1.msra.mxu0 %v394_v41  ;;  %872 = vmatpush1.msra.mxu1 %v394_v41 }
 0x12b   :  { %531 = vmatmul.mubr.f32.vlgmr.msra.gmra.mxu0 %v67_v55  ;;  %537 = vmatmul.mubr.f32.vlgmr.msra.gmra.mxu1 %v68_v54  ;;  %v83_v54 = vld [vmem:[%s1248_s5] sm:$0xff] }
 0x12c   :  { %542 = vmatprep.mubr.f32.mxu1 %v902_v3 }
 0x12f   :  { %543 = vmatmul.mubr.f32.gmra.mxu1 %v69_v42  ;;  %v84_v42 = vld [vmem:[%s1248_s5 + $0x8] sm:$0xff] }
 0x130   :  { %548 = vmatprep.mubr.f32.mxu1 %v902_v3 }
 0x133   :  { %549 = vmatmul.mubr.f32.gmra.mxu1 %v70_v43  ;;  %v85_v43 = vld [vmem:[%s1248_s5 + $0x10] sm:$0xff] }
 0x134   :  { %554 = vmatprep.mubr.f32.mxu1 %v902_v3 }
 0x137   :  { %555 = vmatmul.mubr.f32.gmra.mxu1 %v71_v44  ;;  %v86_v44 = vld [vmem:[%s1248_s5 + $0x18] sm:$0xff]  ;;  %s905_s5 = smov [#allocation3]  }
 0x138   :  { %560 = vmatprep.mubr.f32.mxu1 %v902_v3  ;;  %s811_s29 = sshll.u32 %s905_s5, 4  ;;  %s812_s29 = int_to_ptr.vmem [resolvable:$true] %s811_s29 }
 0x139   :  { %s880_s30 = scalar_lea.vmem %s812_s29, 32  ;;  %p885_p1 = scmp.lt.s32.totalorder %s812_s29, %s812_s29 }
 0x13a   :  { %p881_p0 = scmp.ne.s32.totalorder %s812_s29, %s880_s30  ;;  %p886_p2 = scmp.lt.s32.totalorder %s880_s30, %s880_s30 }
 0x13b   :  { %561 = vmatmul.mubr.f32.gmra.mxu1 %v72_v45  ;;  %v598_v45 = vpop.permute.xlu0 %597 }
 0x13c   :  { %566 = vmatprep.mubr.f32.mxu1 %v902_v3  ;;  %p887_p3 = por %p886_p2, %p885_p1 }
 0x13e   :  { %p888_p4 = pnand %p887_p3, %p881_p0 }
 0x13f   :  { %567 = vmatmul.mubr.f32.gmra.mxu1 %v73_v46  ;;  %v603_v46 = vpop.permute.xlu1 %602 }
 0x140   :  { %572 = vmatprep.mubr.f32.mxu1 %v902_v3 }
 0x143   :  { %573 = vmatmul.mubr.f32.gmra.mxu1 %v74_v47  ;;  %v608_v47 = vpop.permute.xlu0 %607 }
 0x144   :  { %692 = vmatprep.mubr.f32.mxu1 %v902_v3 }
 0x1eb   :  { %v538_v48 = vpop.f32.mrf.mxu1  ;;  %v532_v28 = vpop.f32.mrf.mxu0 }
 0x1ec   :  { %v539_v37 = vadd.f32 %v538_v48, %v434_v33  ;;  %v533_v39 = vadd.f32 %v532_v28, %v429_v60 }
 0x1ed   :  { %v540_v49 = vpop.f32.mrf.mxu1  ;;  %v534_v62 = vpop.f32.mrf.mxu0 }
 0x1ee   :  { %v541_v35 = vadd.f32 %v540_v49, %v434_v33  ;;  %v535_v38 = vadd.f32 %v534_v62, %v429_v60  ;;  %v581_v56 = vmax.f32 %v539_v37, 0.0  ;;  %v579_v55 = vmax.f32 %v533_v39, 0.0 }
 0x1ef   :  { %v544_v50 = vpop.f32.mrf.mxu1 }
 0x1f0   :  { %v545_v34 = vadd.f32 %v544_v50, %v439_v27  ;;  %v582_v57 = vmax.f32 %v541_v35, 0.0  ;;  %v580_v41 = vmax.f32 %v535_v38, 0.0  ;;  %v613_v50 = vpop.permute.xlu1 %612 }
 0x1f1   :  { %v546_v51 = vpop.f32.mrf.mxu1 }
 0x1f2   :  { %v547_v32 = vadd.f32 %v546_v51, %v439_v27  ;;  %v583_v40 = vmax.f32 %v545_v34, 0.0  ;;  %v776_v34 = vlaneseq }
 0x1f3   :  { %v550_v52 = vpop.f32.mrf.mxu1 }
 0x1f4   :  { %v551_v0 = vadd.f32 %v550_v52, %v444_v6  ;;  %v584_v58 = vmax.f32 %v547_v32, 0.0  ;;  %v777_v37 = vshrl.u32 %v776_v34, 7  ;;  %vm802_vm3 = vcmp.lt.s32.totalorder %v776_v34, 256 }
 0x1f5   :  { %v552_v53 = vpop.f32.mrf.mxu1 }
 0x1f6   :  { %v553_v1 = vadd.f32 %v552_v53, %v444_v6  ;;  %v585_v59 = vmax.f32 %v551_v0, 0.0 }
 0x1f7   :  { %v556_v14 = vpop.f32.mrf.mxu1 }
 0x1f8   :  { %v557_v2 = vadd.f32 %v556_v14, %v449_v20  ;;  %v586_v36 = vmax.f32 %v553_v1, 0.0  ;;  %v728_v14 = vpop.permute.xlu0 %727 }
 0x1f9   :  { %v558_v15 = vpop.f32.mrf.mxu1 }
 0x1fa   :  { %v559_v26 = vadd.f32 %v558_v15, %v449_v20  ;;  %v587_v61 = vmax.f32 %v557_v2, 0.0 }
 0x1fb   :  { %v562_v16 = vpop.f32.mrf.mxu1 }
 0x1fc   :  { %v563_v25 = vadd.f32 %v562_v16, %v454_v19  ;;  %v588_v63 = vmax.f32 %v559_v26, 0.0 }
 0x1fd   :  { %v564_v17 = vpop.f32.mrf.mxu1 }
 0x1fe   :  { %v565_v23 = vadd.f32 %v564_v17, %v454_v19  ;;  %v589_v31 = vmax.f32 %v563_v25, 0.0  ;;  %v733_v19 = vpop.permute.xlu1 %732 }
 0x1ff   :  { %v568_v12 = vpop.f32.mrf.mxu1 }
 0x200   :  { %v569_v7 = vadd.f32 %v568_v12, %v459_v18  ;;  %v590_v30 = vmax.f32 %v565_v23, 0.0 }
 0x201   :  { %v570_v11 = vpop.f32.mrf.mxu1 }
 0x202   :  { %v571_v8 = vadd.f32 %v570_v11, %v459_v18  ;;  %v591_v29 = vmax.f32 %v569_v7, 0.0  ;;  %v743_v1 = vpop.permute.xlu1 %742 }
 0x203   :  { %v574_v10 = vpop.f32.mrf.mxu1 }
 0x204   :  { %v575_v9 = vadd.f32 %v574_v10, %v464_v13  ;;  %v592_v4 = vmax.f32 %v571_v8, 0.0 }
 0x205   :  { %v576_v21 = vpop.f32.mrf.mxu1 }
 0x206   :  { %v577_v22 = vadd.f32 %v576_v21, %v464_v13  ;;  %v593_v5 = vmax.f32 %v575_v9, 0.0 }
 0x208   :  { %v594_v24 = vmax.f32 %v577_v22, 0.0  ;;  %v738_v22 = vpop.permute.xlu0 %737 }
 0x20a   :  { %644 = vmatprep.subr.mxu1 %v594_v24 }
 0x20b   :  { %645 = vmatpush1.msra.mxu1 %v593_v5 }
 0x20c   :  { %646 = vmatprep.subr.mxu1 %v592_v4 }
 0x20d   :  { %647 = vmatpush1.msra.mxu1 %v591_v29 }
 0x20e   :  { %648 = vmatprep.subr.mxu1 %v590_v30 }
 0x20f   :  { %649 = vmatpush1.msra.mxu1 %v589_v31 }
 0x210   :  { %650 = vmatprep.subr.mxu1 %v588_v63 }
 0x211   :  { %651 = vmatpush1.msra.mxu1 %v587_v61 }
 0x212   :  { %652 = vmatprep.subr.mxu1 %v586_v36 }
 0x213   :  { %653 = vmatpush1.msra.mxu1 %v585_v59 }
 0x214   :  { %654 = vmatprep.subr.mxu1 %v584_v58 }
 0x215   :  { %655 = vmatpush1.msra.mxu1 %v583_v40  ;;  %v904_v40 = vmov 1966171168  }
 0x216   :  { %656 = vmatprep.subr.mxu1 %v582_v57  ;;  %v786_v57 = vunpack.c.l.s4 %v904_v40 }
 0x217   :  { %657 = vmatpush1.msra.mxu1 %v581_v56  ;;  %v778_v56 = vsub.s32 0, %v777_v37 }
 0x218   :  { %658 = vmatprep.subr.mxu1 %v580_v41 }
 0x219   :  { %659 = vmatpush1.msra.mxu1 %v579_v55 }
 0x21a   :  { %837 = vmatmul.mubr.msk.f32.vlgmr.msra.gmra.mxu1 %vm615_vm2, %v83_v54  ;;  %v774_v54 = vpop.permute.xlu0 %773 }
 0x21b   :  { %698 = vmatprep.mubr.f32.mxu1 %v902_v3 }
 0x21e   :  { %838 = vmatmul.mubr.msk.f32.gmra.mxu1 %vm615_vm2, %v84_v42 }
 0x21f   :  { %704 = vmatprep.mubr.f32.mxu1 %v902_v3 }
 0x222   :  { %839 = vmatmul.mubr.msk.f32.gmra.mxu1 %vm615_vm2, %v85_v43 }
 0x223   :  { %710 = vmatprep.mubr.f32.mxu1 %v902_v3 }
 0x226   :  { %840 = vmatmul.mubr.msk.f32.gmra.mxu1 %vm615_vm2, %v86_v44  ;;  %v787_v44 = vunpack.c.0.s8 %v786_v57 }
 0x2da   :  { %v694_v48 = vpop.f32.mrf.mxu1 }
 0x2db   :  { %v695_v51 = vadd.f32 %v694_v48, %v598_v45 }
 0x2dc   :  { %v696_v49 = vpop.f32.mrf.mxu1 }
 0x2dd   :  { %v697_v15 = vadd.f32 %v696_v49, %v598_v45  ;;  %v717_v3 = vmax.f32 %v695_v51, 0.0  ;;  %v779_v45 = vrot.slane %v774_v54, %v778_v56  ;;  %v790_v49 = vsub.s32 %v787_v44, %v777_v37 }
 0x2de   :  { %v700_v52 = vpop.f32.mrf.mxu1 }
 0x2df   :  { %v701_v53 = vadd.f32 %v700_v52, %v603_v46  ;;  %v718_v10 = vmax.f32 %v697_v15, 0.0  ;;  %v745_v7 = vmul.f32 %v728_v14, %v717_v3 }
 0x2e0   :  { %v702_v16 = vpop.f32.mrf.mxu1 }
 0x2e1   :  { %v719_v13 = vmax.f32 %v701_v53, 0.0  ;;  %v703_v17 = vadd.f32 %v702_v16, %v603_v46  ;;  %v746_v26 = vmul.f32 %v728_v14, %v718_v10 }
 0x2e2   :  { %v706_v18 = vpop.f32.mrf.mxu1 }
 0x2e3   :  { %v720_v12 = vmax.f32 %v703_v17, 0.0  ;;  %v707_v11 = vadd.f32 %v706_v18, %v608_v47  ;;  %v747_v9 = vmul.f32 %v733_v19, %v719_v13 }
 0x2e4   :  { %v708_v20 = vpop.f32.mrf.mxu1 }
 0x2e5   :  { %v721_v21 = vmax.f32 %v707_v11, 0.0  ;;  %v709_v8 = vadd.f32 %v708_v20, %v608_v47  ;;  %v748_v24 = vmul.f32 %v733_v19, %v720_v12  ;;  %v753_v27 = vadd.f32 %v747_v9, %v745_v7 }
 0x2e6   :  { %v712_v23 = vpop.f32.mrf.mxu1 }
 0x2e7   :  { %v749_v6 = vmul.f32 %v738_v22, %v721_v21  ;;  %v722_v25 = vmax.f32 %v709_v8, 0.0  ;;  %v713_v5 = vadd.f32 %v712_v23, %v613_v50  ;;  %v762_v30 = vadd.f32 %v748_v24, %v746_v26 }
 0x2e8   :  { %v714_v4 = vpop.f32.mrf.mxu1 }
 0x2e9   :  { %v750_v28 = vmul.f32 %v738_v22, %v722_v25  ;;  %v723_v2 = vmax.f32 %v713_v5, 0.0  ;;  %v715_v29 = vadd.f32 %v714_v4, %v613_v50  ;;  %v754_v0 = vadd.f32 %v753_v27, %v749_v6 }
 0x2eb   :  { %v751_v31 = vmul.f32 %v743_v1, %v723_v2  ;;  %v724_v32 = vmax.f32 %v715_v29, 0.0  ;;  %v763_v63 = vadd.f32 %v762_v30, %v750_v28 }
 0x2ed   :  { %v755_v33 = vadd.f32 %v754_v0, %v751_v31  ;;  %v752_v62 = vmul.f32 %v743_v1, %v724_v32 }
 0x2ef   :  { %v756_v61 = vrot.slane %v755_v33, 4  ;;  %v764_v35 = vadd.f32 %v763_v63, %v752_v62 }
 0x2f1   :  { %v757_v36 = vadd.f32 %v756_v61, %v755_v33  ;;  %v765_v60 = vrot.slane %v764_v35, 4 }
 0x2f3   :  { %v758_v59 = vrot.slane %v757_v36, 2  ;;  %v766_v38 = vadd.f32 %v765_v60, %v764_v35 }
 0x2f5   :  { %v759_v58 = vadd.f32 %v758_v59, %v757_v36  ;;  %v767_v39 = vrot.slane %v766_v38, 2 }
 0x2f7   :  { %v760_v41 = vrot.slane %v759_v58, 1  ;;  %v768_v55 = vadd.f32 %v767_v39, %v766_v38 }
 0x2f9   :  { %v761_v42 = vadd.f32 %v760_v41, %v759_v58  ;;  %v769_v43 = vrot.slane %v768_v55, 1 }
 0x2fb   :  { %v770_v46 = vadd.f32 %v769_v43, %v768_v55  ;;  %v780_v47 = vadd.f32 %v779_v45, %v761_v42 }
 0x2fd   :  { %v781_v48 = vadd.f32 %v779_v45, %v770_v46 }
 0x2ff   :  { %v784_v50 = vcombine.low %v780_v47, %v781_v48 }
 0x301   :  { %v791_v51 = vrot.slane %v784_v50, %v790_v49 }
 0x303   :  { %v798_v52 = vrot.slane %v791_v51, %v790_v49 }
 0x305   :  { %804 = vst.msk [vmem:[#allocation3] sm:$0x3] %vm802_vm3, %v798_v52 }
 0x306   :  { %891 = shalt.err (!%p888_p4)
}
 0x307   :  { %814 = dma.vmem_to_hbm [thread:$0]  %s812_s29, 32, %s1252_s9, [#allocation4]  }
 0x308   :  { %900 = dma.done.wait [#allocation4], 32  }
 0x309   :  { %901 = vsyncadd [#allocation4], 4294967264 }
 0x30a   :  { %818 = vsyncpa [#allocation4], 1 }

</bundles_post_ra>
